<compile_context>
chip_gen: v7x
topology: tpu7x:2x2x1
jax: 0.10.0
libtpu: 0.0.40
codegen_flags: <defaults>
</compile_context>

<pallas_src>
import functools

import jax
import jax.numpy as jnp
import numpy as np
from jax.experimental import pallas as pl
from jax.experimental.pallas import tpu as pltpu


# ----------------------------- Pallas kernel ------------------------------ #
def vid_encoder_kernel(x_ref, eps_ref,
                       w1_ref, b1_ref,
                       wh_ref, bh_ref,
                       out_ref, kl_ref):
    """Fused per row-tile:
         h          = relu(x @ W1 + b1)
         [mu | lv]  = h @ [Wm | Wl] + [bm | bl]      (fused head matmul)
         z          = mu + eps * exp(0.5 * lv)
         out        = [z | mu | lv]                  (one lane-dense store)
         kl_partial = -0.5 * sum(1 + lv - mu^2 - var),  var = std*std
    """
    x = x_ref[...].astype(jnp.float32)

    # encoder1: Linear + ReLU (build_mlp, final_nonlinearity=True, norm='none')
    h = jnp.dot(x, w1_ref[...], preferred_element_type=jnp.float32) + b1_ref[...]
    h = jnp.maximum(h, 0.0)

    # fused mu / logvar heads: single MXU pass over (H, 2*D)
    ml = jnp.dot(h, wh_ref[...], preferred_element_type=jnp.float32) + bh_ref[...]
    D = ml.shape[-1] // 2
    mu = ml[:, :D]
    lv = ml[:, D:]

    # reparameterize (training & sample=True path): z = eps * std + mu
    std = jnp.exp(0.5 * lv)
    z = mu + eps_ref[...].astype(jnp.float32) * std

    # single concatenated output slab [z | mu | lv]  -> one dense store stream
    out_ref[...] = jnp.concatenate([z, mu, lv], axis=-1)

    # KL(N(mu, var) || N(0, 1)) partial for this tile.  var = std*std reuses
    # the already-computed exp (no second transcendental on the EUP slot).
    var = std * std
    kl_ref[0, 0] = -0.5 * jnp.sum(1.0 + lv - mu * mu - var)


# ------------------------------ JAX wrapper -------------------------------- #
@functools.partial(jax.jit, static_argnames=("tile_rows",))
def vid_encoder_forward(feats, eps, params, tile_rows=256):
    """feats: (Dt, V, 2*input_dim); eps: (Dt, V, output_dim).

    Returns (obj_z, kl_loss, ori_z, src_feats) mirroring VidEncoder.forward:
      obj_z    : (Dt, V, D) reparameterized latent
      kl_loss  : scalar KL divergence (mean over Dt*V samples)
      ori_z    : (Dt, V, D) the mean (mu) before sampling
      src_feats: the input features passed through
    """
    Dt, V, F = feats.shape
    D = params["wm"].shape[1]
    H = params["w1"].shape[1]
    N = Dt * V
    TM = min(tile_rows, N)       # toy shapes -> single grid step (grid=(1,))
    assert N % TM == 0

    x2 = feats.reshape(N, F).astype(jnp.float32)
    eps2 = eps.reshape(N, D).astype(jnp.float32)

    # Fuse the two heads: (H, 2*D) weight, (1, 2*D) bias.  (Cheap XLA concat.)
    wh = jnp.concatenate([params["wm"], params["wl"]], axis=1)
    bh = jnp.concatenate([params["bm"], params["bl"]], axis=1)

    num_tiles = N // TM
    grid = (num_tiles,)
    row_spec = lambda last: pl.BlockSpec((TM, last), lambda i: (i, 0))
    full_spec = lambda r, c: pl.BlockSpec((r, c), lambda i: (0, 0))
    # TODO(synk): at production sizes (H >= 4096) single-buffer the
    # grid-invariant weights (pipeline_mode=pl.Buffered(1)) and cast weights
    # to bf16 to fit v7x's 64 MiB VMEM; unnecessary at these toy shapes.

    out2, kl_parts = pl.pallas_call(
        vid_encoder_kernel,
        out_shape=(
            jax.ShapeDtypeStruct((N, 3 * D), jnp.float32),      # [z | mu | lv]
            jax.ShapeDtypeStruct((num_tiles, 1), jnp.float32),  # per-tile KL
        ),
        grid=grid,
        in_specs=[
            row_spec(F),                                  # x tile
            row_spec(D),                                  # eps tile
            full_spec(F, H),                              # W1
            full_spec(1, H),                              # b1
            full_spec(H, 2 * D),                          # [Wm | Wl]
            full_spec(1, 2 * D),                          # [bm | bl]
        ],
        out_specs=(
            row_spec(3 * D),
            pl.BlockSpec((1, 1), lambda i: (i, 0), memory_space=pltpu.SMEM),
        ),
        compiler_params=pltpu.CompilerParams(
            dimension_semantics=("parallel",)),           # no cross-tile carry
    )(x2, eps2, params["w1"], params["b1"], wh, bh)

    z2 = out2[:, :D]
    mu2 = out2[:, D:2 * D]

    obj_z = z2.reshape(Dt, V, D)
    ori_z = mu2.reshape(Dt, V, D)
    # TODO(synk): `_forward` is abstract (NotImplementedError) in the reference
    # module, so the exact KL weighting/pipeline is subclass-defined; here we
    # use the standard VAE KL averaged over the Dt*V samples.
    kl_loss = jnp.sum(kl_parts) / jnp.float32(N)
    return obj_z, kl_loss, ori_z, feats


# -------------------------- pure-JAX reference ----------------------------- #
def reference_forward(feats, eps, params):
    Dt, V, F = feats.shape
    x = feats.reshape(Dt * V, F)
    h = jnp.maximum(x @ params["w1"] + params["b1"], 0.0)
    mu = h @ params["wm"] + params["bm"]
    lv = h @ params["wl"] + params["bl"]
    z = mu + eps.reshape(Dt * V, -1) * jnp.exp(0.5 * lv)
    kl = -0.5 * jnp.sum(1.0 + lv - mu * mu - jnp.exp(lv)) / (Dt * V)
    D = mu.shape[-1]
    return z.reshape(Dt, V, D), kl, mu.reshape(Dt, V, D)


# --------------------------------- main ------------------------------------ #
if __name__ == "__main__":
    # Small shapes implied by the module: input_dim=16 (feat dim = 2*16=32),
    # hidden_dims=(64,), output_dim=32, Dt=8 timesteps, V=4 objects.
    input_dim, hidden, output_dim = 16, 64, 32
    Dt, V = 8, 4
    F = 2 * input_dim

    key = jax.random.PRNGKey(0)
    kf, ke, k1, k2, k3, k4, k5, k6 = jax.random.split(key, 8)

    feats = jax.random.normal(kf, (Dt, V, F), dtype=jnp.float32)
    eps = jax.random.normal(ke, (Dt, V, output_dim), dtype=jnp.float32)

    # Deterministic synthetic parameters (PyTorch Linear shapes, stored (in,out)).
    params = {
        "w1": 0.1 * jax.random.normal(k1, (F, hidden), dtype=jnp.float32),
        "b1": 0.05 * jax.random.normal(k2, (1, hidden), dtype=jnp.float32),
        "wm": 0.1 * jax.random.normal(k3, (hidden, output_dim), dtype=jnp.float32),
        "bm": 0.05 * jax.random.normal(k4, (1, output_dim), dtype=jnp.float32),
        "wl": 0.1 * jax.random.normal(k5, (hidden, output_dim), dtype=jnp.float32),
        "bl": 0.05 * jax.random.normal(k6, (1, output_dim), dtype=jnp.float32),
    }

    obj_z, kl_loss, ori_z, src_feats = vid_encoder_forward(feats, eps, params)
    jax.block_until_ready((obj_z, kl_loss, ori_z, src_feats))

    # Correctness check against a pure-JAX reference.
    z_ref, kl_ref, mu_ref = reference_forward(feats, eps, params)
    np.testing.assert_allclose(np.asarray(obj_z), np.asarray(z_ref), rtol=1e-5, atol=1e-5)
    np.testing.assert_allclose(np.asarray(ori_z), np.asarray(mu_ref), rtol=1e-5, atol=1e-5)
    np.testing.assert_allclose(float(kl_loss), float(kl_ref), rtol=1e-4, atol=1e-5)

    print("KERNEL_OK")
</pallas_src>

<mosaic_0001>
module attributes {stable_mosaic.version = 11 : i64} {
  func.func @vid_encoder_kernel(%arg0: i32, %arg1: memref<32x32xf32, #tpu.memory_space<vmem>>, %arg2: memref<32x32xf32, #tpu.memory_space<vmem>>, %arg3: memref<32x64xf32, #tpu.memory_space<vmem>>, %arg4: memref<1x64xf32, #tpu.memory_space<vmem>>, %arg5: memref<64x64xf32, #tpu.memory_space<vmem>>, %arg6: memref<1x64xf32, #tpu.memory_space<vmem>>, %arg7: memref<32x96xf32, #tpu.memory_space<vmem>>, %arg8: memref<1x1xf32, #tpu.memory_space<smem>>) attributes {dimension_semantics = [#tpu.dimension_semantics<parallel>], iteration_bounds = array<i64: 1>, scalar_prefetch = 0 : i64, scratch_operands = 0 : i64, tpu.core_type = #tpu.core_type<tc>, window_params = [{transform_indices = @transform_0, window_bounds = array<i64: 32, 32>}, {transform_indices = @transform_1, window_bounds = array<i64: 32, 32>}, {pipeline_mode = #tpu.pipeline_mode<synchronous>, transform_indices = @transform_2, window_bounds = array<i64: 32, 64>}, {pipeline_mode = #tpu.pipeline_mode<synchronous>, transform_indices = @transform_3, window_bounds = array<i64: 1, 64>}, {pipeline_mode = #tpu.pipeline_mode<synchronous>, transform_indices = @transform_4, window_bounds = array<i64: 64, 64>}, {pipeline_mode = #tpu.pipeline_mode<synchronous>, transform_indices = @transform_5, window_bounds = array<i64: 1, 64>}, {transform_indices = @transform_6, window_bounds = array<i64: 32, 96>}, {transform_indices = @transform_7, window_bounds = array<i64: 1, 1>}]} {
    %c0 = arith.constant 0 : index
    %c0_0 = arith.constant 0 : index
    %0 = vector.load %arg1[%c0, %c0_0] : memref<32x32xf32, #tpu.memory_space<vmem>>, vector<32x32xf32>
    %c0_1 = arith.constant 0 : index
    %c0_2 = arith.constant 0 : index
    %1 = vector.load %arg3[%c0_1, %c0_2] : memref<32x64xf32, #tpu.memory_space<vmem>>, vector<32x64xf32>
    %cst = arith.constant dense<0.000000e+00> : vector<32x64xf32>
    %2 = tpu.matmul %0, %1, %cst {dimension_numbers = #tpu.dot_dimension_numbers<[1], [0], [0], [1], [0, 0, 1, 1], [], []>} : vector<32x32xf32>, vector<32x64xf32>, vector<32x64xf32> -> vector<32x64xf32>
    %c0_3 = arith.constant 0 : index
    %c0_4 = arith.constant 0 : index
    %3 = vector.load %arg4[%c0_3, %c0_4] : memref<1x64xf32, #tpu.memory_space<vmem>>, vector<1x64xf32>
    %4 = vector.broadcast %3 : vector<1x64xf32> to vector<32x64xf32>
    %5 = arith.addf %2, %4 : vector<32x64xf32>
    %cst_5 = arith.constant 0.000000e+00 : f32
    %6 = vector.broadcast %cst_5 : f32 to vector<32x64xf32>
    %7 = arith.maximumf %5, %6 : vector<32x64xf32>
    %c0_6 = arith.constant 0 : index
    %c0_7 = arith.constant 0 : index
    %8 = vector.load %arg5[%c0_6, %c0_7] : memref<64x64xf32, #tpu.memory_space<vmem>>, vector<64x64xf32>
    %cst_8 = arith.constant dense<0.000000e+00> : vector<32x64xf32>
    %9 = tpu.matmul %7, %8, %cst_8 {dimension_numbers = #tpu.dot_dimension_numbers<[1], [0], [0], [1], [0, 0, 1, 1], [], []>} : vector<32x64xf32>, vector<64x64xf32>, vector<32x64xf32> -> vector<32x64xf32>
    %c0_9 = arith.constant 0 : index
    %c0_10 = arith.constant 0 : index
    %10 = vector.load %arg6[%c0_9, %c0_10] : memref<1x64xf32, #tpu.memory_space<vmem>>, vector<1x64xf32>
    %11 = vector.broadcast %10 : vector<1x64xf32> to vector<32x64xf32>
    %12 = arith.addf %9, %11 : vector<32x64xf32>
    %13 = vector.extract_strided_slice %12 {offsets = [0, 0], sizes = [32, 32], strides = [1, 1]} : vector<32x64xf32> to vector<32x32xf32>
    %14 = vector.extract_strided_slice %12 {offsets = [0, 32], sizes = [32, 32], strides = [1, 1]} : vector<32x64xf32> to vector<32x32xf32>
    %cst_11 = arith.constant 5.000000e-01 : f32
    %15 = vector.broadcast %cst_11 : f32 to vector<32x32xf32>
    %16 = arith.mulf %15, %14 : vector<32x32xf32>
    %17 = math.exp %16 : vector<32x32xf32>
    %c0_12 = arith.constant 0 : index
    %c0_13 = arith.constant 0 : index
    %18 = vector.load %arg2[%c0_12, %c0_13] : memref<32x32xf32, #tpu.memory_space<vmem>>, vector<32x32xf32>
    %19 = arith.mulf %18, %17 : vector<32x32xf32>
    %20 = arith.addf %13, %19 : vector<32x32xf32>
    %21 = tpu.concatenate %20, %13, %14 in 1 : vector<32x32xf32>, vector<32x32xf32>, vector<32x32xf32> -> vector<32x96xf32>
    %c0_14 = arith.constant 0 : index
    %c0_15 = arith.constant 0 : index
    %22 = vector.load %arg7[%c0_14, %c0_15] : memref<32x96xf32, #tpu.memory_space<vmem>>, vector<32x96xf32>
    tpu.vector_store %arg7[%c0_14, %c0_15], %21 {strides = array<i32>} : memref<32x96xf32, #tpu.memory_space<vmem>>, vector<32x96xf32>,
    %23 = arith.mulf %17, %17 : vector<32x32xf32>
    %cst_16 = arith.constant 1.000000e+00 : f32
    %24 = vector.broadcast %cst_16 : f32 to vector<32x32xf32>
    %25 = arith.addf %24, %14 : vector<32x32xf32>
    %26 = arith.mulf %13, %13 : vector<32x32xf32>
    %27 = arith.subf %25, %26 : vector<32x32xf32>
    %28 = arith.subf %27, %23 : vector<32x32xf32>
    %29 = vector.shape_cast %28 : vector<32x32xf32> to vector<1x32x32xf32>
    %cst_17 = arith.constant dense<0.000000e+00> : vector<1xf32>
    %30 = vector.multi_reduction <add>, %29, %cst_17 [1, 2] : vector<1x32x32xf32> to vector<1xf32>
    %31 = vector.shape_cast %30 : vector<1xf32> to vector<1x1x1xf32>
    %32 = vector.extract %31[0, 0, 0] : f32 from vector<1x1x1xf32>
    %cst_18 = arith.constant -5.000000e-01 : f32
    %33 = arith.mulf %cst_18, %32 : f32
    %c0_19 = arith.constant 0 : index
    %c0_20 = arith.constant 0 : index
    %34 = memref.load %arg8[%c0_19, %c0_20] : memref<1x1xf32, #tpu.memory_space<smem>>
    memref.store %33, %arg8[%c0_19, %c0_20] : memref<1x1xf32, #tpu.memory_space<smem>>
    return
  }
  func.func @transform_0(%arg0: i32) -> (i32, i32) {
    %c0_i32 = arith.constant 0 : i32
    %c0_i32_0 = arith.constant 0 : i32
    return %arg0, %c0_i32 : i32, i32
  }
  func.func @transform_1(%arg0: i32) -> (i32, i32) {
    %c0_i32 = arith.constant 0 : i32
    %c0_i32_0 = arith.constant 0 : i32
    return %arg0, %c0_i32 : i32, i32
  }
  func.func @transform_2(%arg0: i32) -> (i32, i32) {
    %c0_i32 = arith.constant 0 : i32
    %c0_i32_0 = arith.constant 0 : i32
    %c0_i32_1 = arith.constant 0 : i32
    return %c0_i32, %c0_i32_0 : i32, i32
  }
  func.func @transform_3(%arg0: i32) -> (i32, i32) {
    %c0_i32 = arith.constant 0 : i32
    %c0_i32_0 = arith.constant 0 : i32
    %c0_i32_1 = arith.constant 0 : i32
    return %c0_i32, %c0_i32_0 : i32, i32
  }
  func.func @transform_4(%arg0: i32) -> (i32, i32) {
    %c0_i32 = arith.constant 0 : i32
    %c0_i32_0 = arith.constant 0 : i32
    %c0_i32_1 = arith.constant 0 : i32
    return %c0_i32, %c0_i32_0 : i32, i32
  }
  func.func @transform_5(%arg0: i32) -> (i32, i32) {
    %c0_i32 = arith.constant 0 : i32
    %c0_i32_0 = arith.constant 0 : i32
    %c0_i32_1 = arith.constant 0 : i32
    return %c0_i32, %c0_i32_0 : i32, i32
  }
  func.func @transform_6(%arg0: i32) -> (i32, i32) {
    %c0_i32 = arith.constant 0 : i32
    %c0_i32_0 = arith.constant 0 : i32
    return %arg0, %c0_i32 : i32, i32
  }
  func.func @transform_7(%arg0: i32) -> (i32, i32) {
    %c0_i32 = arith.constant 0 : i32
    %c0_i32_0 = arith.constant 0 : i32
    return %arg0, %c0_i32 : i32, i32
  }
}

</mosaic_0001>

<bundles_post_ra>
// kernel: vid_encoder_forward.1
= control target key start
LH: loop header
LB: loop body
LE: loop exit
PB: predicated region body
PF: predicated region fallthrough
CT: control target
= control target key end

     0   :  { %vm41_vm0 = vcmask 261120   ;;  %s725_s0 = inlined_call_operand.vmem [shape: f32[32,32], index: 0, kind: input, shape index: {}]   ;;  %s726_s1 = inlined_call_operand.vmem [shape: f32[32,32], index: 1, kind: input, shape index: {}]   ;;  %s727_s2 = inlined_call_operand.vmem [shape: f32[32,64], index: 2, kind: input, shape index: {}]   ;;  %s728_s3 = inlined_call_operand.vmem [shape: f32[1,64], index: 3, kind: input, shape index: {}]   ;;  %s729_s4 = inlined_call_operand.vmem [shape: f32[64,64], index: 4, kind: input, shape index: {}]   ;;  %s730_s5 = inlined_call_operand.vmem [shape: f32[1,64], index: 5, kind: input, shape index: {}]   ;;  %s731_s6 = inlined_call_operand.vmem [shape: f32[32,96], index: 6, kind: output, shape index: {0}]   ;;  %s732_s7 = inlined_call_operand.hbm [shape: f32[1,1], index: 7, kind: output, shape index: {1}]  }
   0x1   :  { %v30_v0 = vld [vmem:[%s727_s2] sm:$0xff]  ;;  %v31_v1 = vld [vmem:[%s727_s2 + $0x8] sm:$0xff]  ;;  %v32_v2 = vld [vmem:[%s727_s2 + $0x10] sm:$0xff] }
   0x2   :  { %v479_v3 = vpack.c.bf16 %v31_v1, %v30_v0  ;;  %v33_v4 = vld [vmem:[%s727_s2 + $0x18] sm:$0xff]  ;;  %v26_v5 = vld [vmem:[%s725_s0] sm:$0xff]  ;;  %v144_v8 = vld [vmem:[%s729_s4 + $0x8] sm:$0xff] }
   0x3   :  { %v483_v6 = vpack.c.bf16 %v33_v4, %v32_v2  ;;  %451 = vmatprep.mubr.msk.f32.mxu0 %vm41_vm0, %v26_v5  ;;  %v143_v7 = vld [vmem:[%s729_s4] sm:$0xff]  ;;  %v145_v9 = vld [vmem:[%s729_s4 + $0x10] sm:$0xff]  ;;  %v146_v10 = vld [vmem:[%s729_s4 + $0x18] sm:$0xff] }
   0x4   :  { %480 = vmatprep.subr.bf16.mxu0 %v479_v3  ;;  %v487_v11 = vpack.c.bf16 %v144_v8, %v143_v7  ;;  %v491_v12 = vpack.c.bf16 %v146_v10, %v145_v9 }
   0x5   :  { %482 = vmatpush3.bf16.msra.mxu0 %v479_v3 }
   0x6   :  { %13 = vsyncpa [#allocation3], 0  ;;  %484 = vmatprep.subr.bf16.mxu0 %v483_v6  ;;  %v147_v13 = vld [vmem:[%s729_s4 + $0x20] sm:$0xff]  ;;  %v148_v14 = vld [vmem:[%s729_s4 + $0x28] sm:$0xff]  ;;  %488 = vmatprep.subr.bf16.mxu1 %v487_v11  ;;  %vm158_vm1 = vcmask 523264   ;;  %vm320_vm2 = vcmask 785408  }
   0x7   :  { %490 = vmatpush3.bf16.msra.mxu1 %v487_v11  ;;  %v27_v15 = vld [vmem:[%s725_s0 + $0x8] sm:$0xff]  ;;  %v495_v16 = vpack.c.bf16 %v148_v14, %v147_v13  ;;  %v28_v17 = vld [vmem:[%s725_s0 + $0x10] sm:$0xff]  ;;  %v29_v18 = vld [vmem:[%s725_s0 + $0x18] sm:$0xff]  ;;  %s516_s29 = scalar_lea.hbm %s732_s7, 16 }
   0x8   :  { %492 = vmatprep.subr.bf16.mxu1 %v491_v12  ;;  %v149_v19 = vld [vmem:[%s729_s4 + $0x30] sm:$0xff]  ;;  %v150_v20 = vld [vmem:[%s729_s4 + $0x38] sm:$0xff]  ;;  %v413_v22 = vld [vmem:[%s728_s3] ss:$0 sm:$0xff]  ;;  %s528_s4 = smov 32   ;;  %p517_p0 = scmp.ne.s32.totalorder %s732_s7, %s516_s29 }
   0x9   :  { %486 = vmatpush3.bf16.msra.mxu0 %v483_v6  ;;  %v499_v21 = vpack.c.bf16 %v150_v20, %v149_v19  ;;  %v418_v35 = vld [vmem:[%s730_s5] ss:$0 sm:$0xff]  ;;  %s529_s5 = smov 96   ;;  %p520_p1 = scmp.lt.u32.totalorder %s516_s29, %s732_s7 }
   0xb   :  { %494 = vmatpush3.bf16.msra.mxu1 %v491_v12  ;;  %p522_p2 = pnand %p520_p1, %p517_p0 }
   0xc   :  { %452 = vmatmul.mubr.msk.f32.vlgmr.msra.gmra.mrb[0].mxu0 %vm41_vm0, %v27_v15  ;;  %496 = vmatprep.subr.bf16.mxu1 %v495_v16 }
   0xd   :  { %454 = vmatprep.mubr.msk.f32.mxu0 %vm41_vm0, %v28_v17 }
   0xf   :  { %498 = vmatpush3.bf16.msra.mxu1 %v495_v16 }
  0x10   :  { %455 = vmatmul.mubr.msk.f32.gmra.mrb[2].mxu0 %vm41_vm0, %v29_v18  ;;  %500 = vmatprep.subr.bf16.mxu1 %v499_v21 }
  0x13   :  { %502 = vmatpush3.bf16.msra.mxu1 %v499_v21 }
  0xdf   :  { %v453_v23 = vpop.f32.mrb[0].mxu0 }
  0xe0   :  { %v126_v24 = vadd.f32 %v453_v23, %v413_v22  ;;  %v120_v25 = vpop.f32.mrb[1].mxu0 }
  0xe1   :  { %v121_v26 = vadd.f32 %v413_v22, %v120_v25 }
  0xe2   :  { %v140_v29 = vmax.f32 %v126_v24, 0.0 }
  0xe3   :  { %v139_v27 = vmax.f32 %v121_v26, 0.0  ;;  %v456_v28 = vpop.f32.mrb[2].mxu0 }
  0xe4   :  { %v136_v30 = vadd.f32 %v456_v28, %v413_v22  ;;  %v130_v31 = vpop.f32.mrb[3].mxu0 }
  0xe5   :  { %v131_v32 = vadd.f32 %v413_v22, %v130_v31  ;;  %473 = vmatprep.mubr.msk.f32.mxu1 %vm158_vm1, %v139_v27 }
  0xe6   :  { %474 = vmatmul.mubr.msk.f32.vlgmr.msra.gmra.mrb[0].mxu1 %vm158_vm1, %v140_v29  ;;  %v142_v34 = vmax.f32 %v136_v30, 0.0  ;;  %v268_v29 = vld [vmem:[%s726_s1] sm:$0xff] }
  0xe7   :  { %v141_v33 = vmax.f32 %v131_v32, 0.0  ;;  %v269_v32 = vld [vmem:[%s726_s1 + $0x8] sm:$0xff] }
  0xe9   :  { %476 = vmatprep.mubr.msk.f32.mxu1 %vm158_vm1, %v141_v33 }
  0xea   :  { %477 = vmatmul.mubr.msk.f32.gmra.mrb[2].mxu1 %vm158_vm1, %v142_v34 }
 0x1b9   :  { %v475_v36 = vpop.f32.mrb[0].mxu1 }
 0x1ba   :  { %v237_v37 = vpop.f32.mrb[1].mxu1  ;;  %v635_v39 = vadd.f32 %v475_v36, %v418_v35  ;;  %v270_v36 = vld [vmem:[%s726_s1 + $0x10] sm:$0xff] }
 0x1bb   :  { %v633_v38 = vadd.f32 %v418_v35, %v237_v37 }
 0x1bc   :  { %v334_v46 = vmul.f32 %v635_v39, %v635_v39  ;;  %v257_v49 = vmul.f32 0.5, %v635_v39  ;;  %v330_v1 = vadd.f32 1.0, %v635_v39 }
 0x1bd   :  { %v478_v40 = vpop.f32.mrb[2].mxu1  ;;  %v333_v41 = vmul.f32 %v633_v38, %v633_v38  ;;  %v256_v48 = vmul.f32 0.5, %v633_v38  ;;  %v329_v57 = vadd.f32 1.0, %v633_v38 }
 0x1be   :  { %v247_v42 = vpop.f32.mrb[3].mxu1  ;;  %v642_v44 = vadd.f32 %v478_v40, %v418_v35  ;;  %v262_v52 = vmul.f32 1.442695, %v257_v49 }
 0x1bf   :  { %v639_v43 = vadd.f32 %v418_v35, %v247_v42  ;;  %341 = vrot.lane.b32.xlu0 %v333_v41, %s528_s4  ;;  %v260_v50 = vmul.f32 1.442695, %v256_v48 }
 0x1c0   :  { %v336_v47 = vmul.f32 %v642_v44, %v642_v44  ;;  %v259_v53 = vmul.f32 0.5, %v642_v44  ;;  %v332_v11 = vadd.f32 1.0, %v642_v44 }
 0x1c1   :  { %v335_v45 = vmul.f32 %v639_v43, %v639_v43  ;;  %v258_v51 = vmul.f32 0.5, %v639_v43  ;;  %508 = vpow2.f32 %v260_v50  ;;  %v331_v0 = vadd.f32 1.0, %v639_v43 }
 0x1c2   :  { %510 = vpow2.f32 %v262_v52  ;;  %v266_v55 = vmul.f32 1.442695, %v259_v53 }
 0x1c3   :  { %345 = vrot.lane.b32.xlu1 %v335_v45, %s528_s4  ;;  %343 = vrot.lane.b32.xlu0 %v334_v46, %s528_s4  ;;  %v264_v54 = vmul.f32 1.442695, %v258_v51 }
 0x1c5   :  { %512 = vpow2.f32 %v264_v54 }
 0x1c6   :  { %514 = vpow2.f32 %v266_v55 }
 0x1c7   :  { %347 = vrot.lane.b32.xlu1 %v336_v47, %s528_s4 }
 0x1cb   :  { %v509_v56 = vpop.eup %508 }
 0x1cc   :  { %v511_v59 = vpop.eup %510  ;;  %v325_v60 = vmul.f32 %v509_v56, %v509_v56 }
 0x1cd   :  { %v326_v6 = vmul.f32 %v511_v59, %v511_v59 }
 0x1cf   :  { %v513_v62 = vpop.eup %512 }
 0x1d0   :  { %v327_v4 = vmul.f32 %v513_v62, %v513_v62  ;;  %v515_v8 = vpop.eup %514 }
 0x1d1   :  { %v328_v13 = vmul.f32 %v515_v8, %v515_v8 }
 0x231   :  { %v342_v58 = vpop.permute.xlu0 %341 }
 0x232   :  { %v353_v61 = vsub.f32 %v329_v57, %v342_v58 }
 0x234   :  { %v357_v63 = vsub.f32 %v353_v61, %v325_v60 }
 0x235   :  { %v346_v2 = vpop.permute.xlu1 %345  ;;  %v344_v3 = vpop.permute.xlu0 %343 }
 0x236   :  { %v355_v5 = vsub.f32 %v331_v0, %v346_v2  ;;  %v354_v7 = vsub.f32 %v330_v1, %v344_v3  ;;  %365 = vrot.lane.b32.xlu0 %v357_v63, %s529_s5 }
 0x238   :  { %v359_v9 = vsub.f32 %v355_v5, %v327_v4  ;;  %v358_v10 = vsub.f32 %v354_v7, %v326_v6 }
 0x239   :  { %v348_v12 = vpop.permute.xlu1 %347 }
 0x23a   :  { %v356_v14 = vsub.f32 %v332_v11, %v348_v12  ;;  %367 = vrot.lane.b32.xlu1 %v358_v10, %s529_s5  ;;  %369 = vrot.lane.b32.xlu0 %v359_v9, %s529_s5 }
 0x23c   :  { %v360_v15 = vsub.f32 %v356_v14, %v328_v13 }
 0x23e   :  { %371 = vrot.lane.b32.xlu1 %v360_v15, %s529_s5 }
 0x242   :  { %276 = vrot.lane.b32.xlu1 %v509_v56, %s529_s5 }
 0x246   :  { %278 = vrot.lane.b32.xlu1 %v511_v59, %s529_s5 }
 0x24a   :  { %280 = vrot.lane.b32.xlu1 %v513_v62, %s529_s5 }
 0x24e   :  { %282 = vrot.lane.b32.xlu1 %v515_v8, %s529_s5 }
 0x252   :  { %300 = vrot.lane.b32.xlu1 %v633_v38, %s528_s4 }
 0x256   :  { %302 = vrot.lane.b32.xlu1 %v635_v39, %s528_s4 }
 0x25a   :  { %304 = vrot.lane.b32.xlu1 %v639_v43, %s528_s4 }
 0x25e   :  { %306 = vrot.lane.b32.xlu1 %v642_v44, %s528_s4 }
 0x2a8   :  { %v366_v16 = vpop.permute.xlu0 %365 }
 0x2a9   :  { %v377_v19 = vsel %vm41_vm0, %v366_v16, 0.0 }
 0x2ac   :  { %v368_v17 = vpop.permute.xlu1 %367  ;;  %v370_v18 = vpop.permute.xlu0 %369 }
 0x2ad   :  { %v378_v20 = vsel %vm41_vm0, %v368_v17, 0.0  ;;  %v380_v22 = vsel %vm41_vm0, %v370_v18, 0.0 }
 0x2ae   :  { %v379_v21 = vadd.f32 %v378_v20, %v377_v19 }
 0x2b0   :  { %v381_v23 = vadd.f32 %v380_v22, %v379_v21  ;;  %v372_v24 = vpop.permute.xlu1 %371 }
 0x2b1   :  { %v382_v25 = vsel %vm41_vm0, %v372_v24, 0.0 }
 0x2b2   :  { %v383_v26 = vadd.f32 %v382_v25, %v381_v23 }
 0x2b4   :  { %v277_v27 = vpop.permute.xlu1 %276  ;;  %384 = vadd.xlane.f32.xlu0 %v383_v26 }
 0x2b5   :  { %v288_v31 = vmul.f32 %v277_v27, %v268_v29 }
 0x2b7   :  { %v292_v34 = vadd.f32 %v288_v31, %v633_v38  ;;  %v271_v38 = vld [vmem:[%s726_s1 + $0x18] sm:$0xff] }
 0x2b8   :  { %v279_v28 = vpop.permute.xlu1 %278 }
 0x2b9   :  { %v289_v35 = vmul.f32 %v279_v28, %v269_v32 }
 0x2bb   :  { %v293_v42 = vadd.f32 %v289_v35, %v635_v39 }
 0x2bc   :  { %v281_v30 = vpop.permute.xlu1 %280 }
 0x2bd   :  { %v290_v45 = vmul.f32 %v281_v30, %v270_v36 }
 0x2bf   :  { %v294_v49 = vadd.f32 %v290_v45, %v639_v43 }
 0x2c0   :  { %v283_v33 = vpop.permute.xlu1 %282 }
 0x2c1   :  { %v291_v50 = vmul.f32 %v283_v33, %v271_v38 }
 0x2c3   :  { %v295_v53 = vadd.f32 %v291_v50, %v642_v44 }
 0x2c4   :  { %v301_v37 = vpop.permute.xlu1 %300 }
 0x2c5   :  { %v312_v40 = vsel %vm41_vm0, %v292_v34, %v301_v37 }
 0x2c6   :  { %v316_v41 = vsel %vm158_vm1, %v312_v40, %v301_v37 }
 0x2c7   :  { %321 = vst.msk [vmem:[%s731_s6] sm:$0xff] %vm320_vm2, %v316_v41 }
 0x2c8   :  { %v303_v46 = vpop.permute.xlu1 %302 }
 0x2c9   :  { %v313_v47 = vsel %vm41_vm0, %v293_v42, %v303_v46 }
 0x2ca   :  { %v317_v48 = vsel %vm158_vm1, %v313_v47, %v303_v46 }
 0x2cb   :  { %322 = vst.msk [vmem:[%s731_s6 + $0x8] sm:$0xff] %vm320_vm2, %v317_v48 }
 0x2cc   :  { %v305_v39 = vpop.permute.xlu1 %304 }
 0x2cd   :  { %v314_v51 = vsel %vm41_vm0, %v294_v49, %v305_v39 }
 0x2ce   :  { %v318_v52 = vsel %vm158_vm1, %v314_v51, %v305_v39 }
 0x2cf   :  { %323 = vst.msk [vmem:[%s731_s6 + $0x10] sm:$0xff] %vm320_vm2, %v318_v52 }
 0x2d0   :  { %v307_v54 = vpop.permute.xlu1 %306 }
 0x2d1   :  { %v315_v43 = vsel %vm41_vm0, %v295_v53, %v307_v54 }
 0x2d2   :  { %v319_v55 = vsel %vm158_vm1, %v315_v43, %v307_v54 }
 0x2d3   :  { %324 = vst.msk [vmem:[%s731_s6 + $0x18] sm:$0xff] %vm320_vm2, %v319_v55 }
 0x341   :  { %v385_v56 = vpop.xlane.xlu0 %384 }
 0x342   :  { %v386_v57 = vrot.slane %v385_v56, 4 }
 0x344   :  { %v387_v58 = vadd.f32 %v386_v57, %v385_v56 }
 0x346   :  { %v388_v59 = vrot.slane %v387_v58, 2 }
 0x348   :  { %v389_v44 = vadd.f32 %v388_v59, %v387_v58 }
 0x34a   :  { %v390_v60 = vrot.slane %v389_v44, 1 }
 0x34c   :  { %v391_v61 = vadd.f32 %v390_v60, %v389_v44 }
 0x34e   :  { %503 = vpush %v391_v61 }
 0x37f   :  { %s504_s25 = spop %503 }
 0x380   :  { %s393_s26 = smul.f32 -0.5, %s504_s25 }
 0x382   :  { %395 = sst [smem:[#allocation2]] %s393_s26 }
 0x383   :  { %525 = shalt.err (!%p522_p2)
}
 0x384   :  { %s530_s10 = smov [#allocation2]  }
 0x385   :  { %405 = dma.smem_to_hbm %s530_s10, 16, %s732_s7, [#allocation3]  }
 0x386   :  { %526 = dma.done.wait [#allocation3], 16  }
 0x387   :  { %527 = vsyncadd [#allocation3], 4294967280 }
 0x388   :  { %411 = sfence }
 0x389   :  { %412 = vsyncpa [#allocation3], 1 }

</bundles_post_ra>
